<compile_context>
chip_gen: v5e
topology: v5e:2x2
jax: 0.10.0
libtpu: 0.0.40
codegen_flags: <defaults>
</compile_context>

<pallas_src>
import jax
import jax.numpy as jnp
from jax.experimental import pallas as pl
from jax.experimental.pallas import tpu as pltpu


# ----------------------------------------------------------------------------- kernels
def _swiglu_kernel_direct(x_ref, w1_ref, b1_ref, w2_ref, b2_ref, w3_ref, b3_ref,
                          o_ref):
    """f32-output variant: accumulate straight into o_ref (resident across d_ff)."""
    j = pl.program_id(1)

    @pl.when(j == 0)
    def _init():
        o_ref[...] = jnp.zeros_like(o_ref)

    # Ride the weights' MXU path: cast x once to the weight dtype (no-op for f32).
    x = x_ref[...].astype(w1_ref.dtype)
    h1 = jnp.dot(x, w1_ref[...], preferred_element_type=jnp.float32) + b1_ref[...]
    h2 = jnp.dot(x, w2_ref[...], preferred_element_type=jnp.float32) + b2_ref[...]
    # SiLU(h1) * h2 — elementwise along d_ff, so tiling d_ff is exact.
    g = (h1 * jax.nn.sigmoid(h1)) * h2
    # Cast the LHS to w3's dtype (bf16 when prepped) so the dot stays on the fast path.
    o_ref[...] += jnp.dot(g.astype(w3_ref.dtype), w3_ref[...],
                          preferred_element_type=jnp.float32)

    @pl.when(j == pl.num_programs(1) - 1)
    def _finalize():
        o_ref[...] = o_ref[...] + b3_ref[...]


def _swiglu_kernel_scratch(x_ref, w1_ref, b1_ref, w2_ref, b2_ref, w3_ref, b3_ref,
                           o_ref, acc_ref):
    """Narrow-output (e.g. bf16) variant: f32 VMEM scratch accumulator, cast at the end."""
    j = pl.program_id(1)

    @pl.when(j == 0)
    def _init():
        acc_ref[...] = jnp.zeros_like(acc_ref)

    x = x_ref[...].astype(w1_ref.dtype)
    h1 = jnp.dot(x, w1_ref[...], preferred_element_type=jnp.float32) + b1_ref[...]
    h2 = jnp.dot(x, w2_ref[...], preferred_element_type=jnp.float32) + b2_ref[...]
    g = (h1 * jax.nn.sigmoid(h1)) * h2
    acc_ref[...] += jnp.dot(g.astype(w3_ref.dtype), w3_ref[...],
                            preferred_element_type=jnp.float32)

    @pl.when(j == pl.num_programs(1) - 1)
    def _finalize():
        o_ref[...] = (acc_ref[...] + b3_ref[...]).astype(o_ref.dtype)


# ----------------------------------------------------------------------------- helpers
def prepare_swiglu_params(w1, b1, w2, b2, w3, b3, dtype=None):
    """One-time prep: nn.Linear weights are [out, in] -> transpose to [in, out];
    biases -> (1, out).  Pass dtype=jnp.bfloat16 to get the fast bf16 MXU path
    (mandatory on v5e; recommended everywhere) — then also cast x to bf16 at the call
    (or let the kernel cast it, at the cost of f32 x HBM traffic)."""
    w1t, w2t, w3t = w1.T, w2.T, w3.T
    b1r, b2r, b3r = b1.reshape(1, -1), b2.reshape(1, -1), b3.reshape(1, -1)
    if dtype is not None:
        w1t, w2t, w3t = (w.astype(dtype) for w in (w1t, w2t, w3t))
    return w1t, b1r, w2t, b2r, w3t, b3r


def _vmem_capacity_bytes():
    try:
        info = pltpu.get_tpu_info()
        cap = getattr(info, "vmem_capacity_bytes", None)
        if cap:
            return int(cap)
    except Exception:
        pass
    return 64 << 20  # conservative fallback (v7x per-TC)


# ----------------------------------------------------------------------------- wrapper
def swiglu_pallas(x, w1t, b1r, w2t, b2r, w3t, b3r, *, tm=None, tf=512,
                  vmem_limit_bytes=None):
    """x: [N, d_model] (flatten leading dims first). Params from prepare_swiglu_params.

    Tuning guidance (arithmetic intensity per weight byte == tm):
      v5e:  tm=512,      tf=512, bf16 weights + bf16 x (f32 MXU is emulated, avoid it)
      v6e:  tm=768-1024, tf=512, bf16
      v7x:  tm=512,      tf=256-512 (64 MiB VMEM per TC), bf16
    Defaults pick tm from the chip's VMEM capacity when tm is None.
    """
    N, d_model = x.shape
    d_ff = w1t.shape[1]
    out_dtype = x.dtype

    vmem_cap = _vmem_capacity_bytes()
    if tm is None:
        tm = 512 if vmem_cap <= (64 << 20) else 1024

    tm = min(tm, N)
    tf = min(tf, d_ff)

    # Dtype-aware sublane granule: 8 rows for 32-bit, 16 for bf16, 32 for int8.
    xsz = jnp.dtype(x.dtype).itemsize
    sub = max(8, 32 // xsz)

    # Keep >= 2 token tiles when possible so the "parallel" axis feeds both v7x TCs.
    if tm == N and N >= 2 * sub and (N // 2) % sub == 0 and N % 2 == 0:
        tm = N // 2

    assert N % tm == 0, "N must be divisible by tm (pad tokens if needed)"
    assert d_ff % tf == 0, "d_ff must be divisible by tf"
    assert tf % 128 == 0 or tf == d_ff, "tf must be lane-aligned (x128) or full d_ff"
    assert tm % sub == 0 or tm == N, (
        f"tm must be a multiple of {sub} for dtype {x.dtype} (or equal N)")

    grid = (N // tm, d_ff // tf)
    use_scratch = out_dtype != jnp.float32  # f32 outputs accumulate directly in o_ref

    # VMEM budget: double-buffered tiles + (tm, tf) f32 intermediates (h1, h2, g)
    # + optional f32 accumulator scratch, with slack; capped at physical VMEM - 8 MiB.
    wsz = jnp.dtype(w1t.dtype).itemsize
    est = (2 * (tm * d_model * xsz                 # x tile
                + 2 * d_model * tf * wsz           # w1, w2 tiles
                + tf * d_model * wsz               # w3 tile
                + 2 * 8 * tf * 4                   # b1, b2 (sublane-padded)
                + 8 * d_model * 4                  # b3 (sublane-padded)
                + tm * d_model * xsz)              # out tile
           + 3 * tm * tf * 4)                      # h1, h2, g intermediates (f32)
    if use_scratch:
        est += tm * d_model * 4
    if vmem_limit_bytes is None:
        vmem_limit_bytes = max(16 << 20,
                               min(int(est * 1.25) + (4 << 20),
                                   vmem_cap - (8 << 20)))

    in_specs = [
        pl.BlockSpec((tm, d_model), lambda i, j: (i, 0)),   # x tile (resident over j)
        pl.BlockSpec((d_model, tf), lambda i, j: (0, j)),   # w1^T tile
        pl.BlockSpec((1, tf),       lambda i, j: (0, j)),   # b1 tile
        pl.BlockSpec((d_model, tf), lambda i, j: (0, j)),   # w2^T tile
        pl.BlockSpec((1, tf),       lambda i, j: (0, j)),   # b2 tile
        pl.BlockSpec((tf, d_model), lambda i, j: (j, 0)),   # w3^T tile
        pl.BlockSpec((1, d_model),  lambda i, j: (0, 0)),   # b3 (epilogue only)
    ]
    out_spec = pl.BlockSpec((tm, d_model), lambda i, j: (i, 0))

    kernel = _swiglu_kernel_scratch if use_scratch else _swiglu_kernel_direct
    scratch = [pltpu.VMEM((tm, d_model), jnp.float32)] if use_scratch else []

    return pl.pallas_call(
        kernel,
        out_shape=jax.ShapeDtypeStruct((N, d_model), out_dtype),
        grid_spec=pltpu.PrefetchScalarGridSpec(
            num_scalar_prefetch=0,
            grid=grid,
            in_specs=in_specs,
            out_specs=out_spec,
            scratch_shapes=scratch,
        ),
        compiler_params=pltpu.CompilerParams(
            dimension_semantics=("parallel", "arbitrary"),
            vmem_limit_bytes=vmem_limit_bytes,
        ),
    )(x, w1t, b1r, w2t, b2r, w3t, b3r)


def swiglu_ref(x, w1, b1, w2, b2, w3, b3):
    h1 = x @ w1.T + b1
    h2 = x @ w2.T + b2
    return (jax.nn.silu(h1) * h2) @ w3.T + b3


# ----------------------------------------------------------------------------- test
if __name__ == "__main__":
    # Small, lane-aligned shapes so both the token tiling and the d_ff-reduction
    # accumulator path are exercised.
    batch, seq, d_model, d_ff = 2, 64, 128, 256

    key = jax.random.PRNGKey(0)
    kx, k1, k2, k3, kb1, kb2, kb3 = jax.random.split(key, 7)

    x = jax.random.normal(kx, (batch, seq, d_model), dtype=jnp.float32)

    # nn.Linear convention: weight [out, in], bias [out].
    bound1 = 1.0 / (d_model ** 0.5)
    bound3 = 1.0 / (d_ff ** 0.5)
    w1 = jax.random.uniform(k1, (d_ff, d_model), jnp.float32, -bound1, bound1)
    w2 = jax.random.uniform(k2, (d_ff, d_model), jnp.float32, -bound1, bound1)
    w3 = jax.random.uniform(k3, (d_model, d_ff), jnp.float32, -bound3, bound3)
    b1 = jax.random.uniform(kb1, (d_ff,), jnp.float32, -bound1, bound1)
    b2 = jax.random.uniform(kb2, (d_ff,), jnp.float32, -bound1, bound1)
    b3 = jax.random.uniform(kb3, (d_model,), jnp.float32, -bound3, bound3)

    x2d = x.reshape(batch * seq, d_model)      # flatten leading dims like nn.Linear
    ref2d = swiglu_ref(x2d, w1, b1, w2, b2, w3, b3)

    # --- f32 path (direct accumulation into o_ref), grid (2, 2) -------------------
    params = prepare_swiglu_params(w1, b1, w2, b2, w3, b3)
    out2d = swiglu_pallas(x2d, *params, tm=64, tf=128)
    jax.block_until_ready(out2d)
    assert jnp.allclose(out2d, ref2d, atol=2e-5, rtol=2e-5), "f32 mismatch vs reference"

    # --- bf16 fast-MXU path (scratch-accumulator kernel), grid (2, 2) -------------
    params_bf16 = prepare_swiglu_params(w1, b1, w2, b2, w3, b3, dtype=jnp.bfloat16)
    out_bf16 = swiglu_pallas(x2d.astype(jnp.bfloat16), *params_bf16, tm=64, tf=128)
    jax.block_until_ready(out_bf16)
    assert jnp.allclose(out_bf16.astype(jnp.float32), ref2d, atol=5e-2, rtol=5e-2), \
        "bf16 mismatch vs reference"

    out = out2d.reshape(batch, seq, d_model)
    jax.block_until_ready(out)
    print("KERNEL_OK")
</pallas_src>

<mosaic_0001>
module attributes {stable_mosaic.version = 11 : i64} {
  func.func @_swiglu_kernel_direct(%arg0: i32, %arg1: i32, %arg2: memref<64x128xf32, #tpu.memory_space<vmem>>, %arg3: memref<128x128xf32, #tpu.memory_space<vmem>>, %arg4: memref<1x128xf32, #tpu.memory_space<vmem>>, %arg5: memref<128x128xf32, #tpu.memory_space<vmem>>, %arg6: memref<1x128xf32, #tpu.memory_space<vmem>>, %arg7: memref<128x128xf32, #tpu.memory_space<vmem>>, %arg8: memref<1x128xf32, #tpu.memory_space<vmem>>, %arg9: memref<64x128xf32, #tpu.memory_space<vmem>>) attributes {dimension_semantics = [#tpu.dimension_semantics<parallel>, #tpu.dimension_semantics<arbitrary>], iteration_bounds = array<i64: 2, 2>, scalar_prefetch = 0 : i64, scratch_operands = 0 : i64, tpu.core_type = #tpu.core_type<tc>, window_params = [{transform_indices = @transform_0, window_bounds = array<i64: 64, 128>}, {transform_indices = @transform_1, window_bounds = array<i64: 128, 128>}, {transform_indices = @transform_2, window_bounds = array<i64: 1, 128>}, {transform_indices = @transform_3, window_bounds = array<i64: 128, 128>}, {transform_indices = @transform_4, window_bounds = array<i64: 1, 128>}, {transform_indices = @transform_5, window_bounds = array<i64: 128, 128>}, {pipeline_mode = #tpu.pipeline_mode<synchronous>, transform_indices = @transform_6, window_bounds = array<i64: 1, 128>}, {transform_indices = @transform_7, window_bounds = array<i64: 64, 128>}]} {
    %c0_i32 = arith.constant 0 : i32
    %0 = arith.cmpi eq, %arg1, %c0_i32 : i32
    %1 = arith.extui %0 : i1 to i32
    %c0_i32_0 = arith.constant 0 : i32
    %2 = arith.cmpi ne, %1, %c0_i32_0 : i32
    scf.if %2 {
      %cst_20 = arith.constant 0.000000e+00 : f32
      %29 = vector.broadcast %cst_20 : f32 to vector<64x128xf32>
      %c0_21 = arith.constant 0 : index
      %c0_22 = arith.constant 0 : index
      %30 = vector.load %arg9[%c0_21, %c0_22] : memref<64x128xf32, #tpu.memory_space<vmem>>, vector<64x128xf32>
      tpu.vector_store %arg9[%c0_21, %c0_22], %29 {strides = array<i32>} : memref<64x128xf32, #tpu.memory_space<vmem>>, vector<64x128xf32>,
    } else {
    }
    %c0 = arith.constant 0 : index
    %c0_1 = arith.constant 0 : index
    %3 = vector.load %arg2[%c0, %c0_1] : memref<64x128xf32, #tpu.memory_space<vmem>>, vector<64x128xf32>
    %c0_2 = arith.constant 0 : index
    %c0_3 = arith.constant 0 : index
    %4 = vector.load %arg3[%c0_2, %c0_3] : memref<128x128xf32, #tpu.memory_space<vmem>>, vector<128x128xf32>
    %cst = arith.constant dense<0.000000e+00> : vector<64x128xf32>
    %5 = tpu.matmul %3, %4, %cst {dimension_numbers = #tpu.dot_dimension_numbers<[1], [0], [0], [1], [0, 0, 1, 1], [], []>} : vector<64x128xf32>, vector<128x128xf32>, vector<64x128xf32> -> vector<64x128xf32>
    %c0_4 = arith.constant 0 : index
    %c0_5 = arith.constant 0 : index
    %6 = vector.load %arg4[%c0_4, %c0_5] : memref<1x128xf32, #tpu.memory_space<vmem>>, vector<1x128xf32>
    %7 = vector.broadcast %6 : vector<1x128xf32> to vector<64x128xf32>
    %8 = arith.addf %5, %7 : vector<64x128xf32>
    %c0_6 = arith.constant 0 : index
    %c0_7 = arith.constant 0 : index
    %9 = vector.load %arg5[%c0_6, %c0_7] : memref<128x128xf32, #tpu.memory_space<vmem>>, vector<128x128xf32>
    %cst_8 = arith.constant dense<0.000000e+00> : vector<64x128xf32>
    %10 = tpu.matmul %3, %9, %cst_8 {dimension_numbers = #tpu.dot_dimension_numbers<[1], [0], [0], [1], [0, 0, 1, 1], [], []>} : vector<64x128xf32>, vector<128x128xf32>, vector<64x128xf32> -> vector<64x128xf32>
    %c0_9 = arith.constant 0 : index
    %c0_10 = arith.constant 0 : index
    %11 = vector.load %arg6[%c0_9, %c0_10] : memref<1x128xf32, #tpu.memory_space<vmem>>, vector<1x128xf32>
    %12 = vector.broadcast %11 : vector<1x128xf32> to vector<64x128xf32>
    %13 = arith.addf %10, %12 : vector<64x128xf32>
    %14 = arith.negf %8 : vector<64x128xf32>
    %15 = math.exp %14 : vector<64x128xf32>
    %cst_11 = arith.constant 1.000000e+00 : f32
    %16 = vector.broadcast %cst_11 : f32 to vector<64x128xf32>
    %17 = arith.addf %16, %15 : vector<64x128xf32>
    %18 = arith.divf %16, %17 : vector<64x128xf32>
    %19 = arith.mulf %8, %18 : vector<64x128xf32>
    %20 = arith.mulf %19, %13 : vector<64x128xf32>
    %c0_12 = arith.constant 0 : index
    %c0_13 = arith.constant 0 : index
    %21 = vector.load %arg9[%c0_12, %c0_13] : memref<64x128xf32, #tpu.memory_space<vmem>>, vector<64x128xf32>
    %c0_14 = arith.constant 0 : index
    %c0_15 = arith.constant 0 : index
    %22 = vector.load %arg7[%c0_14, %c0_15] : memref<128x128xf32, #tpu.memory_space<vmem>>, vector<128x128xf32>
    %cst_16 = arith.constant dense<0.000000e+00> : vector<64x128xf32>
    %23 = tpu.matmul %20, %22, %cst_16 {dimension_numbers = #tpu.dot_dimension_numbers<[1], [0], [0], [1], [0, 0, 1, 1], [], []>} : vector<64x128xf32>, vector<128x128xf32>, vector<64x128xf32> -> vector<64x128xf32>
    %24 = arith.addf %21, %23 : vector<64x128xf32>
    %c0_17 = arith.constant 0 : index
    %c0_18 = arith.constant 0 : index
    %25 = vector.load %arg9[%c0_17, %c0_18] : memref<64x128xf32, #tpu.memory_space<vmem>>, vector<64x128xf32>
    tpu.vector_store %arg9[%c0_17, %c0_18], %24 {strides = array<i32>} : memref<64x128xf32, #tpu.memory_space<vmem>>, vector<64x128xf32>,
    %c1_i32 = arith.constant 1 : i32
    %26 = arith.cmpi eq, %arg1, %c1_i32 : i32
    %27 = arith.extui %26 : i1 to i32
    %c0_i32_19 = arith.constant 0 : i32
    %28 = arith.cmpi ne, %27, %c0_i32_19 : i32
    scf.if %28 {
      %c0_20 = arith.constant 0 : index
      %c0_21 = arith.constant 0 : index
      %29 = vector.load %arg9[%c0_20, %c0_21] : memref<64x128xf32, #tpu.memory_space<vmem>>, vector<64x128xf32>
      %c0_22 = arith.constant 0 : index
      %c0_23 = arith.constant 0 : index
      %30 = vector.load %arg8[%c0_22, %c0_23] : memref<1x128xf32, #tpu.memory_space<vmem>>, vector<1x128xf32>
      %31 = vector.broadcast %30 : vector<1x128xf32> to vector<64x128xf32>
      %32 = arith.addf %29, %31 : vector<64x128xf32>
      %c0_24 = arith.constant 0 : index
      %c0_25 = arith.constant 0 : index
      %33 = vector.load %arg9[%c0_24, %c0_25] : memref<64x128xf32, #tpu.memory_space<vmem>>, vector<64x128xf32>
      tpu.vector_store %arg9[%c0_24, %c0_25], %32 {strides = array<i32>} : memref<64x128xf32, #tpu.memory_space<vmem>>, vector<64x128xf32>,
    } else {
    }
    return
  }
  func.func @transform_0(%arg0: i32, %arg1: i32) -> (i32, i32) {
    %c0_i32 = arith.constant 0 : i32
    %c0_i32_0 = arith.constant 0 : i32
    return %arg0, %c0_i32 : i32, i32
  }
  func.func @transform_1(%arg0: i32, %arg1: i32) -> (i32, i32) {
    %c0_i32 = arith.constant 0 : i32
    %c0_i32_0 = arith.constant 0 : i32
    return %c0_i32, %arg1 : i32, i32
  }
  func.func @transform_2(%arg0: i32, %arg1: i32) -> (i32, i32) {
    %c0_i32 = arith.constant 0 : i32
    %c0_i32_0 = arith.constant 0 : i32
    return %c0_i32, %arg1 : i32, i32
  }
  func.func @transform_3(%arg0: i32, %arg1: i32) -> (i32, i32) {
    %c0_i32 = arith.constant 0 : i32
    %c0_i32_0 = arith.constant 0 : i32
    return %c0_i32, %arg1 : i32, i32
  }
  func.func @transform_4(%arg0: i32, %arg1: i32) -> (i32, i32) {
    %c0_i32 = arith.constant 0 : i32
    %c0_i32_0 = arith.constant 0 : i32
    return %c0_i32, %arg1 : i32, i32
  }
  func.func @transform_5(%arg0: i32, %arg1: i32) -> (i32, i32) {
    %c0_i32 = arith.constant 0 : i32
    %c0_i32_0 = arith.constant 0 : i32
    return %arg1, %c0_i32 : i32, i32
  }
  func.func @transform_6(%arg0: i32, %arg1: i32) -> (i32, i32) {
    %c0_i32 = arith.constant 0 : i32
    %c0_i32_0 = arith.constant 0 : i32
    %c0_i32_1 = arith.constant 0 : i32
    return %c0_i32, %c0_i32_0 : i32, i32
  }
  func.func @transform_7(%arg0: i32, %arg1: i32) -> (i32, i32) {
    %c0_i32 = arith.constant 0 : i32
    %c0_i32_0 = arith.constant 0 : i32
    return %arg0, %c0_i32 : i32, i32
  }
}

</mosaic_0001>

<bundles_post_ra>
// kernel: tpu_custom_call.1
= control target key start
LH: loop header
LB: loop body
LE: loop exit
PB: predicated region body
PF: predicated region fallthrough
CT: control target
= control target key end

     0   :  { %s2166_s0 = inlined_call_operand.hbm [shape: f32[128,128], index: 0, kind: input, shape index: {}]   ;;  %s2167_s1 = inlined_call_operand.hbm [shape: f32[128,256], index: 1, kind: input, shape index: {}]   ;;  %s2168_s2 = inlined_call_operand.hbm [shape: f32[1,256], index: 2, kind: input, shape index: {}]   ;;  %s2169_s3 = inlined_call_operand.hbm [shape: f32[128,256], index: 3, kind: input, shape index: {}]   ;;  %s2170_s4 = inlined_call_operand.vmem [shape: f32[1,256], index: 4, kind: input, shape index: {}]   ;;  %s2171_s5 = inlined_call_operand.hbm [shape: f32[256,128], index: 5, kind: input, shape index: {}]   ;;  %s2172_s6 = inlined_call_operand.vmem [shape: f32[1,128], index: 6, kind: input, shape index: {}]   ;;  %s2173_s7 = inlined_call_operand.hbm [shape: f32[128,128], index: 7, kind: output, shape index: {}]  }
   0x1   :  { %2191 = sst [smem:[#allocation27_spill]] %s2166_s0 }
   0x2   :  { %2192 = sst [smem:[#allocation28_spill]] %s2167_s1 }
   0x3   :  { %2193 = sst [smem:[#allocation29_spill]] %s2168_s2 }
   0x4   :  { %2194 = sst [smem:[#allocation30_spill]] %s2169_s3 }
   0x5   :  { %2195 = sst [smem:[#allocation31_spill]] %s2170_s4 }
   0x6   :  { %2196 = sst [smem:[#allocation32_spill]] %s2172_s6 }
   0x7   :  { %2197 = sst [smem:[#allocation33_spill]] %s2173_s7 }
   0x8   :  { %12 = vsyncpa [#allocation3], 0 }
   0x9   :  { %14 = vsyncpa [#allocation3 + $0x1], 0 }
   0xa   :  { %15 = vsyncpa [#allocation6], 0 }
   0xb   :  { %17 = vsyncpa [#allocation6 + $0x1], 0 }
   0xc   :  { %18 = vsyncpa [#allocation9], 0 }
   0xd   :  { %20 = vsyncpa [#allocation9 + $0x1], 0 }
   0xe   :  { %21 = vsyncpa [#allocation4], 0 }
   0xf   :  { %23 = vsyncpa [#allocation4 + $0x1], 0  ;;  %s1656_s24 = smov 0   ;;  %s1658_s25 = smov 0  }
  0x10   :  { %s1660_s26 = smov 0   ;;  %s1662_s27 = smov 0  }
  0x11   :  { %s1664_s28 = smov 0   ;;  %s1666_s29 = smov 0  }
  0x12   :  { %s1668_s30 = smov 0   ;;  %s1670_s8 = smov 0  }
  0x13   :  { %s1672_s9 = smov 0   ;;  %s1674_s10 = smov 0  }
  0x14   :  { %s1676_s11 = smov 0  }
  0x15 LB: > { %2198 = sst [smem:[#allocation16_spill]] %s1588_s29  ;;  %p56_p0 = scmp.eq.s32.totalorder %s1608_s11, 0  ;;  %s1608_s11 = sphi %s1676_s11, %s29_s11   ;;  %s1604_s10 = sphi %s1674_s10, %s2240_s10   ;;  %s1600_s9 = sphi %s1672_s9, %s2247_s9   ;;  %s1596_s8 = sphi %s1670_s8, %s2238_s8   ;;  %s1592_s30 = sphi %s1668_s30, %s2246_s30   ;;  %s1588_s29 = sphi %s1666_s29, %s2237_s29   ;;  %s1584_s28 = sphi %s1664_s28, %s2245_s28   ;;  %s1580_s27 = sphi %s1662_s27, %s2244_s27   ;;  %s1576_s26 = sphi %s1660_s26, %s2243_s26   ;;  %s1572_s25 = sphi %s1658_s25, %s2242_s25   ;;  %s1568_s24 = sphi %s1656_s24, %s2241_s24  }
  0x16   : > { %2199 = sst [smem:[#allocation17_spill]] %s1592_s30  ;;  %p81_p1 = scmp.ne.s32.totalorder %s1576_s26, %s1572_s25 }
  0x17   : > { %2200 = sst [smem:[#allocation18_spill]] %s1596_s8  ;;  %p87_p2 = scmp.ne.s32.totalorder %s1572_s25, %s1568_s24 }
  0x18   : > { %2201 = sst [smem:[#allocation19_spill]] %s1604_s10  ;;  %p2181_p3 = scmp.lt.s32.totalorder %s1608_s11, 4 }
  0x19   : > { %p83_p4 = por %p81_p1, %p56_p0  ;;  %s287_s13 = sand.u32 1, %s1608_s11  }
  0x1a   : > { %s2174_s14 = sand.u32 1, %s1576_s26   ;;  %s1103_s16 = sshll.u32 %s1600_s9, 3 }
  0x1b   : > { %s1724_s15 = sshll.u32 %s2174_s14, 7  ;;  %s2202_s1 = sld [smem:[#allocation28_spill]] }
  0x1c   : > { %s291_s21 = scalar_lea.vmem [#allocation5], %s1724_s15  ;;  %p1733_p5 = pnand %p2181_p3, %p83_p4 }
  0x1d   : > { %s298_s22 = sshll.u32 %s291_s21, 4  ;;  %p1109_p6 = scmp.ge.s32.totalorder %s1608_s11, 1  ;;  %s299_s22 = int_to_ptr.vmem [resolvable:$true] %s298_s22 }
  0x1e   : > { %p372_p7 = scmp.lt.s32.totalorder %s1608_s11, 5  ;;  %s1739_s14 = scalar_lea.sflag [#allocation6], %s287_s13 }
  0x1f   : > { %s1610_s17 = smov 256   ;;  %s2176_s18 = smov 128  }
  0x20   : > { %p1746_p8 = pnand %p1109_p6, %p372_p7  ;;  %s2205_s3 = sld [smem:[#allocation30_spill]] }
  0x21   : > { %s295_s19 = scalar_lea.hbm %s2202_s1, %s1103_s16  ;;  %s329_s8 = scalar_lea.vmem [#allocation8], %s1724_s15 }
  0x22   : > { %s296_s20 = sshll.u32 %s295_s19, 4  ;;  %s2178_s19 = smov 8   ;;  %s297_s20 = int_to_ptr.hbm [resolvable:$true] %s296_s20 }
  0x23   : > { %1183 = dma.hbm_to_vmem [thread:$0]  (!%p1733_p5), %s297_s20, 2048, %s299_s22, %s1739_s14, %s1610_s17, %s2176_s18, %s2178_s19  }
  0x24   : > { %s336_s6 = sshll.u32 %s329_s8, 4  ;;  %s1754_s20 = scalar_lea.sflag [#allocation9], %s287_s13  ;;  %s337_s6 = int_to_ptr.vmem [resolvable:$true] %s336_s6 }
  0x25   : > { %s1762_s1 = sadd.s32 4294967295, %s1608_s11   ;;  %s1096_s8 = sadd.s32 4294967294, %s1608_s11  }
  0x26   : > { %s333_s7 = scalar_lea.hbm %s2205_s3, %s1103_s16  ;;  %s38_s12 = sadd.s32 1, %s1600_s9 }
  0x27   : > { %s334_s4 = sshll.u32 %s333_s7, 4  ;;  %p39_p9 = scmp.ge.s32.totalorder %s38_s12, 2  ;;  %s335_s4 = int_to_ptr.hbm [resolvable:$true] %s334_s4 }
  0x28   : > { %1189 = dma.hbm_to_vmem [thread:$0]  (!%p1733_p5), %s335_s4, 2048, %s337_s6, %s1754_s20, %s1610_s17, %s2176_s18, %s2178_s19  }
  0x29   : > { %s41_s7 = sadd.s32 1, %s1604_s10  ;;  %s48_s13 = sadd.s32 1, %s1588_s29 }
  0x2a   : > { %p55_p10 = scmp.ne.s32.totalorder %s1588_s29, %s1584_s28  ;;  %s2249_s12 = smov (%p39_p9, %s38_s12), 0 }
  0x2b   : > { %2206 = sst [smem:[#allocation20_spill]] %s2249_s12  ;;  %s2251_s7 = smov (!%p39_p9, %s41_s7), %s1604_s10 }
  0x2c   : > { %p1778_p11 = por %p56_p0, %p55_p10  ;;  %p61_p12 = scmp.ne.s32.totalorder %s1584_s28, %s1580_s27 }
  0x2d   : > { %p43_p13 = scmp.ge.s32.totalorder %s2251_s7, 2  ;;  %p62_p1 = scmp.eq.s32.totalorder %s1762_s1, 0 }
  0x2e   : > { %s71_s6 = ssub.s32 %s1600_s9, %s2249_s12  ;;  %p236_p4 = scmp.eq.s32.totalorder %s1762_s1, 3 }
  0x2f   : > { %s2253_s7 = smov (%p43_p13, %s2251_s7), 0  ;;  %p1793_p6 = por %p62_p1, %p61_p12 }
  0x30   : > { %2208 = sst [smem:[#allocation21_spill]] %s2253_s7  ;;  %p72_p0 = scmp.eq.s32.totalorder %s71_s6, 0 }
  0x31   : > { %s45_s22 = ssub.s32 %s1604_s10, %s2253_s7  ;;  %p1802_p7 = por %p87_p2, %p62_p1 }
  0x32   : > { %p46_p9 = scmp.eq.s32.totalorder %s45_s22, 0  ;;  %p1809_p13 = por %p236_p4, %p55_p10 }
  0x33   : > { %s2210_s17 = scalar_select %p1802_p7, 1, 0 }
  0x34   : > { %s2212_s18 = scalar_select %p1809_p13, 1, 0 }
  0x35   : > { %2211 = sst [smem:[#allocation22_spill]] %s2210_s17  ;;  %s2214_s19 = sadd.s32 1, %s1576_s26 }
  0x36   : > { %2213 = sst [smem:[#allocation23_spill]] %s2212_s18  ;;  %p242_p3 = scmp.eq.s32.totalorder %s1096_s8, 3 }
  0x37   : > { %s1816_s3 = scalar_select %p72_p0, %s1576_s26, %s2214_s19  }
  0x38   : > { %s1819_s12 = scalar_select %p46_p9, %s1588_s29, %s48_s13  }
  0x39   : > { %2215 = sst [smem:[#allocation24_spill]] %s1816_s3  ;;  %s265_s24 = sand.u32 1, %s1588_s29  }
  0x3a   : > { %2216 = sst [smem:[#allocation25_spill]] %s1819_s12  ;;  %s1099_s6 = sshll.u32 %s265_s24, 6 }
  0x3b   : > { %p1825_p2 = por %p242_p3, %p61_p12  ;;  %s1130_s22 = sshll.u32 %s1604_s10, 6 }
  0x3c   : > { %s269_s30 = scalar_lea.vmem [#allocation2], %s1099_s6  ;;  %s2219_s0 = sld [smem:[#allocation27_spill]] }
  0x3d   : > { %s2217_s7 = scalar_select %p1825_p2, 1, 0 }
  0x3e   : > { %s277_s18 = sshll.u32 %s269_s30, 4  ;;  %p2220_p10 = scmp.lt.s32.totalorder %s1608_s11, 4  ;;  %s278_s18 = int_to_ptr.vmem [resolvable:$true] %s277_s18 }
  0x3f   : > { %2218 = sst [smem:[#allocation26_spill]] %s2217_s7  ;;  %s266_s6 = scalar_lea.sflag [#allocation3], %s265_s24 }
  0x40   : > { %p1178_p1 = pnand %p2220_p10, %p1778_p11  ;;  %s2221_s2 = sld [smem:[#allocation29_spill]] }
  0x41   : > { %s2222_s3 = smov 8   ;;  %s2223_s30 = smov 128  }
  0x42   : > { %s274_s13 = scalar_lea.hbm %s2219_s0, %s1130_s22  ;;  %s2224_s22 = sand.u32 1, %s1576_s26  }
  0x43   : > { %s275_s8 = sshll.u32 %s274_s13, 4  ;;  %s311_s19 = scalar_lea.vmem [#allocation7], %s2224_s22  ;;  %s276_s8 = int_to_ptr.hbm [resolvable:$true] %s275_s8 }
  0x44   : > { %1180 = dma.hbm_to_vmem [thread:$0]  (!%p1178_p1), %s276_s8, 1024, %s278_s18, %s266_s6, %s2223_s30, %s2223_s30, %s2222_s3  }
  0x45   : > { %s318_s0 = sshll.u32 %s311_s19, 4  ;;  %s1131_s4 = sshll.u32 %s1600_s9, 7  ;;  %s319_s0 = int_to_ptr.vmem [resolvable:$true] %s318_s0 }
  0x46   : > { %s314_s10 = scalar_lea.hbm %s2221_s2, %s1600_s9  ;;  %s361_s29 = scalar_lea.hbm %s2171_s5, %s1131_s4 }
  0x47   : > { %s316_s17 = sshll.u32 %s314_s10, 4  ;;  %s356_s12 = scalar_lea.vmem [#allocation10], %s1724_s15  ;;  %s317_s17 = int_to_ptr.hbm [resolvable:$true] %s316_s17 }
  0x48   : > { %1186 = dma.hbm_to_vmem [thread:$0]  (!%p1733_p5), %s317_s17, 16, %s319_s0, %s1739_s14  }
  0x49   : > { %s364_s2 = sshll.u32 %s356_s12, 4  ;;  %s362_s24 = sshll.u32 %s361_s29, 4  ;;  %s365_s2 = int_to_ptr.vmem [resolvable:$true] %s364_s2  ;;  %s363_s24 = int_to_ptr.hbm [resolvable:$true] %s362_s24 }
  0x4a   : > { %1192 = dma.hbm_to_vmem [thread:$0]  (!%p1733_p5), %s363_s24, 2048, %s365_s2, %s1754_s20, %s2223_s30, %s2223_s30, %s2222_s3  }
  0x4b   : > { %376 = sbr.rel (%p1746_p8) target bundleno = 529 (0x211), region = 48  ;;  %s1863_s0 = sand.u32 (!%p1746_p8), 1, %s1584_s28  }
  0x4c   : > { %s1110_s10 = sshll.u32 (!%p1746_p8), %s1863_s0, 6  ;;  %s379_s14 = scalar_lea.sflag (!%p1746_p8), [#allocation3], %s1863_s0 }
  0x4d   : > { %s1867_s15 = scalar_lea.vmem (!%p1746_p8), [#allocation2], %s1110_s10 }
  0x50   : > { %1551 = dma.done.wait (%p1793_p6), %s379_s14, 1024  }
  0x51   : > { %1553 = vsyncadd (%p1793_p6), %s379_s14, 4294966272  ;;  %s388_s3 = sand.u32 1, %s1762_s1   ;;  %s390_s23 = sand.u32 1, %s1572_s25  }
  0x52   : > { %s1111_s18 = sshll.u32 %s390_s23, 7  ;;  %s389_s21 = scalar_lea.sflag [#allocation6], %s388_s3 }
  0x53   : > { %s1875_s20 = scalar_lea.vmem [#allocation5], %s1111_s18 }
  0x54   : > { %1555 = dma.done.wait (%p1802_p7), %s389_s21, 2064  }
  0x55   : > { %1557 = vsyncadd (%p1802_p7), %s389_s21, 4294965232  ;;  %s1881_s7 = scalar_lea.vmem [#allocation7], %s390_s23  ;;  %s408_s8 = scalar_lea.sflag [#allocation9], %s388_s3 }
  0x56   : > { %s1883_s16 = scalar_lea.vmem [#allocation8], %s1111_s18 }
  0x57   : > { %1559 = dma.done.wait (%p1802_p7), %s408_s8, 4096  }
  0x58   : > { %1561 = vsyncadd (%p1802_p7), %s408_s8, 4294963200  ;;  %s2226_s1 = sld [smem:[#allocation17_spill]]  ;;  %s1897_s4 = scalar_lea.vmem [#allocation10], %s1111_s18 }
  0x59   : > { %s2227_s22 = sld [smem:[#allocation31_spill]]  ;;  %s1899_s13 = scalar_lea.vmem [#allocation11], %s1110_s10 }
  0x5e   : > { %p476_p3 = scmp.lt.s32.totalorder %s2226_s1, 1  ;;  %p1115_p5 = scmp.ne.s32.totalorder %s2226_s1, 0 }
  0x60   : > { %s1891_s6 = scalar_select %p476_p3, %s2226_s1, 1 }
  0x61   : > { %484 = sbr.rel (%p1115_p5) target bundleno = 111 (0x6f), region = 72 }
  0x62   : > { %s478_s19 = scalar_lea.vmem %s2227_s22, %s1891_s6 }
  0x66   : > { %v1613_v0 = vmov 0.0  }
  0x67   : > { %485 = vst [vmem:[%s1899_s13] sm:$0xff] %v1613_v0 }
  0x68   : > { %486 = vst [vmem:[%s1899_s13 + $0x8] sm:$0xff] %v1613_v0 }
  0x69   : > { %487 = vst [vmem:[%s1899_s13 + $0x10] sm:$0xff] %v1613_v0 }
  0x6a   : > { %488 = vst [vmem:[%s1899_s13 + $0x18] sm:$0xff] %v1613_v0 }
  0x6b   : > { %489 = vst [vmem:[%s1899_s13 + $0x20] sm:$0xff] %v1613_v0 }
  0x6c   : > { %490 = vst [vmem:[%s1899_s13 + $0x28] sm:$0xff] %v1613_v0 }
  0x6d   : > { %491 = vst [vmem:[%s1899_s13 + $0x30] sm:$0xff] %v1613_v0 }
  0x6e   : > { %492 = vst [vmem:[%s1899_s13 + $0x38] sm:$0xff] %v1613_v0 }
  0x6f PF: > { %v516_v1 = vld [vmem:[%s1875_s20 + $0x78] sm:$0xff]  ;;  %v515_v2 = vld [vmem:[%s1875_s20 + $0x70] sm:$0xff]  ;;  %v514_v5 = vld [vmem:[%s1875_s20 + $0x68] sm:$0xff]  ;;  %s2229_s10 = sld [smem:[#allocation17_spill]] }
  0x70   : > { %v1913_v3 = vld [vmem:[%s1883_s16 + $0x78] sm:$0xff]  ;;  %521 = vmatpush.msra.mxu0 %v516_v1  ;;  %v1917_v4 = vld [vmem:[%s1883_s16 + $0x70] sm:$0xff]  ;;  %v1921_v6 = vld [vmem:[%s1883_s16 + $0x68] sm:$0xff]  ;;  %1133 = vmatpush.msra.mxu3 %v516_v1 }
  0x71   : > { %582 = vmatpush.msra.mxu1 %v1913_v3  ;;  %v513_v7 = vld [vmem:[%s1875_s20 + $0x60] sm:$0xff]  ;;  %v512_v9 = vld [vmem:[%s1875_s20 + $0x58] sm:$0xff]  ;;  %v511_v11 = vld [vmem:[%s1875_s20 + $0x50] sm:$0xff] }
  0x72   : > { %522 = vmatpush.msra.mxu0 %v515_v2  ;;  %v1926_v8 = vld [vmem:[%s1883_s16 + $0x60] sm:$0xff]  ;;  %1134 = vmatpush.msra.mxu3 %v515_v2  ;;  %v1931_v10 = vld [vmem:[%s1883_s16 + $0x58] sm:$0xff]  ;;  %v1936_v12 = vld [vmem:[%s1883_s16 + $0x50] sm:$0xff] }
  0x73   : > { %583 = vmatpush.msra.mxu1 %v1917_v4  ;;  %v510_v13 = vld [vmem:[%s1875_s20 + $0x48] sm:$0xff]  ;;  %v509_v15 = vld [vmem:[%s1875_s20 + $0x40] sm:$0xff]  ;;  %v508_v17 = vld [vmem:[%s1875_s20 + $0x38] sm:$0xff] }
  0x74   : > { %523 = vmatpush.msra.mxu0 %v514_v5  ;;  %1135 = vmatpush.msra.mxu3 %v514_v5  ;;  %v1941_v14 = vld [vmem:[%s1883_s16 + $0x48] sm:$0xff]  ;;  %v1946_v16 = vld [vmem:[%s1883_s16 + $0x40] sm:$0xff]  ;;  %v1951_v18 = vld [vmem:[%s1883_s16 + $0x38] sm:$0xff] }
  0x75   : > { %584 = vmatpush.msra.mxu1 %v1921_v6  ;;  %v507_v19 = vld [vmem:[%s1875_s20 + $0x30] sm:$0xff]  ;;  %v506_v21 = vld [vmem:[%s1875_s20 + $0x28] sm:$0xff]  ;;  %v505_v23 = vld [vmem:[%s1875_s20 + $0x20] sm:$0xff]  ;;  %p1124_p8 = scmp.ne.s32.totalorder %s2229_s10, 1 }
  0x76   : > { %524 = vmatpush.msra.mxu0 %v513_v7  ;;  %1136 = vmatpush.msra.mxu3 %v513_v7  ;;  %v568_v20 = vld [vmem:[%s1883_s16 + $0x30] sm:$0xff]  ;;  %v567_v22 = vld [vmem:[%s1883_s16 + $0x28] sm:$0xff]  ;;  %v566_v24 = vld [vmem:[%s1883_s16 + $0x20] sm:$0xff]  ;;  %s2230_s2 = sld [smem:[#allocation32_spill]] (!%p1124_p8) }
  0x77   : > { %585 = vmatpush.msra.mxu1 %v1926_v8  ;;  %v504_v25 = vld [vmem:[%s1875_s20 + $0x18] sm:$0xff]  ;;  %v503_v27 = vld [vmem:[%s1875_s20 + $0x10] sm:$0xff]  ;;  %v502_v29 = vld [vmem:[%s1875_s20 + $0x8] sm:$0xff] }
  0x78   : > { %525 = vmatpush.msra.mxu0 %v512_v9  ;;  %1137 = vmatpush.msra.mxu3 %v512_v9  ;;  %v565_v26 = vld [vmem:[%s1883_s16 + $0x18] sm:$0xff]  ;;  %v564_v28 = vld [vmem:[%s1883_s16 + $0x10] sm:$0xff]  ;;  %v563_v30 = vld [vmem:[%s1883_s16 + $0x8] sm:$0xff] }
  0x79   : > { %586 = vmatpush.msra.mxu1 %v1931_v10  ;;  %v501_v31 = vld [vmem:[%s1875_s20] sm:$0xff]  ;;  %v499_v34 = vld [vmem:[%s1867_s15 + $0x30] sm:$0xff]  ;;  %v494_v35 = vld [vmem:[%s1867_s15 + $0x8] sm:$0xff] }
  0x7a   : > { %526 = vmatpush.msra.mxu0 %v511_v11  ;;  %1138 = vmatpush.msra.mxu3 %v511_v11  ;;  %v562_v32 = vld [vmem:[%s1883_s16] sm:$0xff]  ;;  %v500_v36 = vld [vmem:[%s1867_s15 + $0x38] sm:$0xff]  ;;  %v495_v37 = vld [vmem:[%s1867_s15 + $0x10] sm:$0xff] }
  0x7b   : > { %587 = vmatpush.msra.mxu1 %v1936_v12  ;;  %v493_v33 = vld [vmem:[%s1867_s15] sm:$0xff]  ;;  %v496_v38 = vld [vmem:[%s1867_s15 + $0x18] sm:$0xff]  ;;  %v498_v40 = vld [vmem:[%s1867_s15 + $0x28] sm:$0xff] }
  0x7c   : > { %527 = vmatpush.msra.mxu0 %v510_v13  ;;  %1139 = vmatpush.msra.mxu3 %v510_v13  ;;  %v497_v39 = vld [vmem:[%s1867_s15 + $0x20] sm:$0xff]  ;;  %v813_v42 = vld [vmem:[%s1897_s4 + $0x70] sm:$0xff]  ;;  %v812_v43 = vld [vmem:[%s1897_s4 + $0x68] sm:$0xff] }
  0x7d   : > { %588 = vmatpush.msra.mxu1 %v1941_v14  ;;  %v814_v41 = vld [vmem:[%s1897_s4 + $0x78] sm:$0xff]  ;;  %v811_v44 = vld [vmem:[%s1897_s4 + $0x60] sm:$0xff]  ;;  %v809_v46 = vld [vmem:[%s1897_s4 + $0x50] sm:$0xff] }
  0x7e   : > { %528 = vmatpush.msra.mxu0 %v509_v15  ;;  %1140 = vmatpush.msra.mxu3 %v509_v15  ;;  %v810_v45 = vld [vmem:[%s1897_s4 + $0x58] sm:$0xff]  ;;  %v808_v47 = vld [vmem:[%s1897_s4 + $0x48] sm:$0xff]  ;;  %v807_v48 = vld [vmem:[%s1897_s4 + $0x40] sm:$0xff] }
  0x7f   : > { %589 = vmatpush.msra.mxu1 %v1946_v16  ;;  %815 = vmatpush.msra.mxu2 %v814_v41  ;;  %v806_v49 = vld [vmem:[%s1897_s4 + $0x38] sm:$0xff]  ;;  %v805_v50 = vld [vmem:[%s1897_s4 + $0x30] sm:$0xff]  ;;  %v804_v51 = vld [vmem:[%s1897_s4 + $0x28] sm:$0xff] }
  0x80   : > { %529 = vmatpush.msra.mxu0 %v508_v17  ;;  %1141 = vmatpush.msra.mxu3 %v508_v17  ;;  %v803_v52 = vld [vmem:[%s1897_s4 + $0x20] sm:$0xff]  ;;  %v1999_v53 = vld [vmem:[%s1881_s7] ss:$0 sm:$0xff]  ;;  %v801_v56 = vld [vmem:[%s1897_s4 + $0x10] sm:$0xff] }
  0x81   : > { %590 = vmatpush.msra.mxu1 %v1951_v18  ;;  %816 = vmatpush.msra.mxu2 %v813_v42  ;;  %v802_v54 = vld [vmem:[%s1897_s4 + $0x18] sm:$0xff]  ;;  %v800_v58 = vld [vmem:[%s1897_s4 + $0x8] sm:$0xff]  ;;  %v799_v60 = vld [vmem:[%s1897_s4] sm:$0xff] }
  0x82   : > { %530 = vmatpush.msra.mxu0 %v507_v19  ;;  %1142 = vmatpush.msra.mxu3 %v507_v19 }
  0x83   : > { %591 = vmatpush.msra.mxu1 %v568_v20  ;;  %817 = vmatpush.msra.mxu2 %v812_v43 }
  0x84   : > { %531 = vmatpush.msra.mxu0 %v506_v21  ;;  %1143 = vmatpush.msra.mxu3 %v506_v21 }
  0x85   : > { %592 = vmatpush.msra.mxu1 %v567_v22  ;;  %818 = vmatpush.msra.mxu2 %v811_v44 }
  0x86   : > { %532 = vmatpush.msra.mxu0 %v505_v23  ;;  %1144 = vmatpush.msra.mxu3 %v505_v23 }
  0x87   : > { %593 = vmatpush.msra.mxu1 %v566_v24  ;;  %819 = vmatpush.msra.mxu2 %v810_v45 }
  0x88   : > { %533 = vmatpush.msra.mxu0 %v504_v25  ;;  %1145 = vmatpush.msra.mxu3 %v504_v25 }
  0x89   : > { %594 = vmatpush.msra.mxu1 %v565_v26  ;;  %820 = vmatpush.msra.mxu2 %v809_v46 }
  0x8a   : > { %534 = vmatpush.msra.mxu0 %v503_v27  ;;  %1146 = vmatpush.msra.mxu3 %v503_v27 }
  0x8b   : > { %595 = vmatpush.msra.mxu1 %v564_v28  ;;  %821 = vmatpush.msra.mxu2 %v808_v47 }
  0x8c   : > { %535 = vmatpush.msra.mxu0 %v502_v29  ;;  %1147 = vmatpush.msra.mxu3 %v502_v29 }
  0x8d   : > { %596 = vmatpush.msra.mxu1 %v563_v30  ;;  %822 = vmatpush.msra.mxu2 %v807_v48 }
  0x8e   : > { %536 = vmatpush.msra.mxu0 %v501_v31  ;;  %1148 = vmatpush.msra.mxu3 %v501_v31 }
  0x8f   : > { %597 = vmatpush.msra.mxu1 %v562_v32  ;;  %537 = vmatmul.f32.vlgmr.msra.gmra.mxu0 %v493_v33 }
  0x90   : > { %598 = vmatmul.f32.vlgmr.msra.gmra.mxu1 %v493_v33  ;;  %555 = vmatmul.f32.vlgmr.msra.gmra.mxu3 %v499_v34 }
  0x91   : > { %1149 = vmatpush.msrb.mxu3 %v1913_v3  ;;  %823 = vmatpush.msra.mxu2 %v806_v49 }
  0x93   : > { %1150 = vmatpush.msrb.mxu3 %v1917_v4  ;;  %824 = vmatpush.msra.mxu2 %v805_v50 }
  0x95   : > { %1151 = vmatpush.msrb.mxu3 %v1921_v6  ;;  %825 = vmatpush.msra.mxu2 %v804_v51 }
  0x97   : > { %540 = vmatmul.f32.gmra.mxu0 %v494_v35  ;;  %1152 = vmatpush.msrb.mxu3 %v1926_v8 }
  0x98   : > { %601 = vmatmul.f32.gmra.mxu1 %v494_v35  ;;  %558 = vmatmul.f32.gmra.mxu3 %v500_v36 }
  0x99   : > { %1153 = vmatpush.msrb.mxu3 %v1931_v10  ;;  %826 = vmatpush.msra.mxu2 %v803_v52 }
  0x9b   : > { %1154 = vmatpush.msrb.mxu3 %v1936_v12  ;;  %827 = vmatpush.msra.mxu2 %v802_v54 }
  0x9d   : > { %1155 = vmatpush.msrb.mxu3 %v1941_v14  ;;  %828 = vmatpush.msra.mxu2 %v801_v56 }
  0x9f   : > { %543 = vmatmul.f32.gmra.mxu0 %v495_v37  ;;  %1156 = vmatpush.msrb.mxu3 %v1946_v16 }
  0xa0   : > { %604 = vmatmul.f32.gmra.mxu1 %v495_v37  ;;  %829 = vmatpush.msra.mxu2 %v800_v58 }
  0xa1   : > { %1157 = vmatpush.msrb.mxu3 %v1951_v18 }
  0xa2   : > { %830 = vmatpush.msra.mxu2 %v799_v60 }
  0xa3   : > { %1158 = vmatpush.msrb.mxu3 %v568_v20  ;;  %v2025_v20 = vld [vmem:[%s478_s19] ss:$0 sm:$0xff] }
  0xa5   : > { %1159 = vmatpush.msrb.mxu3 %v567_v22 }
  0xa7   : > { %546 = vmatmul.f32.gmra.mxu0 %v496_v38  ;;  %1160 = vmatpush.msrb.mxu3 %v566_v24 }
  0xa8   : > { %607 = vmatmul.f32.gmra.mxu1 %v496_v38 }
  0xa9   : > { %1161 = vmatpush.msrb.mxu3 %v565_v26 }
  0xab   : > { %1162 = vmatpush.msrb.mxu3 %v564_v28 }
  0xad   : > { %1163 = vmatpush.msrb.mxu3 %v563_v30 }
  0xaf   : > { %549 = vmatmul.f32.gmra.mxu0 %v497_v39  ;;  %1164 = vmatpush.msrb.mxu3 %v562_v32 }
  0xb0   : > { %610 = vmatmul.f32.gmra.mxu1 %v497_v39  ;;  %619 = vmatmul.f32.vlgmr.msrb.gmra.mxu3 %v500_v36 }
  0xb7   : > { %552 = vmatmul.f32.gmra.mxu0 %v498_v40 }
  0xb8   : > { %613 = vmatmul.f32.gmra.mxu1 %v498_v40 }
  0xc0   : > { %616 = vmatmul.f32.gmra.mxu1 %v499_v34 }
 0x10c   : > { %v538_v55 = vpop.f32.mrf.mxu0 }
 0x10d   : > { %v539_v57 = vadd.f32 %v1999_v53, %v538_v55  ;;  %v599_v3 = vpop.f32.mrf.mxu1 }
 0x10e   : > { %v600_v31 = vadd.f32 %v2025_v20, %v599_v3 }
 0x10f   : > { %v1116_v59 = vmul.f32 -1.442695, %v539_v57 }
 0x111   : > { %1295 = vpow2.f32 %v1116_v59 }
 0x113   : > { %v556_v11 = vpop.f32.mrf.mxu3 }
 0x114   : > { %v541_v61 = vpop.f32.mrf.mxu0  ;;  %v2015_v16 = vadd.f32 %v1999_v53, %v556_v11 }
 0x115   : > { %v2007_v62 = vadd.f32 %v1999_v53, %v541_v61  ;;  %v602_v21 = vpop.f32.mrf.mxu1 }
 0x116   : > { %v1122_v29 = vmul.f32 -1.442695, %v2015_v16  ;;  %v603_v51 = vadd.f32 %v2025_v20, %v602_v21 }
 0x117   : > { %v1296_v63 = vpop.eup %1295  ;;  %v1117_v0 = vmul.f32 -1.442695, %v2007_v62 }
 0x118   : > { %v647_v1 = vadd.f32 1.0, %v1296_v63 }
 0x119   : > { %1297 = vpow2.f32 %v1117_v0 }
 0x11a   : > { %1299 = vrcp.f32 %v647_v1  ;;  %v666_v12 = vand.u32 2147483648, %v647_v1  ;;  %v664_v15 = vand.u32 2147483647, %v647_v1  ;;  %vm660_vm1 = vweird.f32 %v647_v1 }
 0x11b   : > { %v559_v37 = vpop.f32.mrf.mxu3 }
 0x11c   : > { %v544_v2 = vpop.f32.mrf.mxu0  ;;  %v667_v23 = vor.u32 1.1754944e-38, %v666_v12  ;;  %vm665_vm3 = vcmp.eq.f32.partialorder %v664_v15, 8.507059e+37  ;;  %v2035_v44 = vadd.f32 %v1999_v53, %v559_v37 }
 0x11d   : > { %v2011_v4 = vadd.f32 %v1999_v53, %v544_v2  ;;  %v605_v48 = vpop.f32.mrf.mxu1 }
 0x11f   : > { %v1298_v5 = vpop.eup %1297  ;;  %v1118_v6 = vmul.f32 -1.442695, %v2011_v4 }
 0x120   : > { %v1300_v7 = vpop.eup %1299  ;;  %v648_v8 = vadd.f32 1.0, %v1298_v5 }
 0x121   : > { %v656_v9 = vmul.f32 %v1300_v7, %v647_v1  ;;  %1301 = vpow2.f32 %v1118_v6  ;;  %vm661_vm0 = vweird.f32 %v1300_v7 }
 0x122   : > { %1303 = vrcp.f32 %v648_v8  ;;  %vm662_vm2 = vmor %vm660_vm1, %vm661_vm0  ;;  %v681_v33 = vand.u32 2147483648, %v648_v8  ;;  %v679_v36 = vand.u32 2147483647, %v648_v8  ;;  %vm675_vm5 = vweird.f32 %v648_v8 }
 0x123   : > { %v657_v10 = vsub.f32 1.0, %v656_v9  ;;  %v606_v9 = vadd.f32 %v2025_v20, %v605_v48 }
 0x124   : > { %v547_v13 = vpop.f32.mrf.mxu0  ;;  %v682_v43 = vor.u32 1.1754944e-38, %v681_v33  ;;  %vm680_vm7 = vcmp.eq.f32.partialorder %v679_v36, 8.507059e+37 }
 0x125   : > { %v658_v14 = vmul.f32 %v1300_v7, %v657_v10  ;;  %v2018_v17 = vadd.f32 %v1999_v53, %v547_v13  ;;  %v608_v11 = vpop.f32.mrf.mxu1 }
 0x127   : > { %v1302_v18 = vpop.eup %1301  ;;  %v659_v19 = vadd.f32 %v1300_v7, %v658_v14  ;;  %v1119_v25 = vmul.f32 -1.442695, %v2018_v17 }
 0x128   : > { %v1304_v22 = vpop.eup %1303  ;;  %v649_v24 = vadd.f32 1.0, %v1302_v18 }
 0x129   : > { %v663_v26 = vsel %vm662_vm2, %v1300_v7, %v659_v19  ;;  %v671_v27 = vmul.f32 %v1304_v22, %v648_v8  ;;  %vm676_vm4 = vweird.f32 %v1304_v22 }
 0x12a   : > { %v668_v28 = vsel %vm665_vm3, %v667_v23, %v663_v26  ;;  %1305 = vrcp.f32 %v649_v24  ;;  %vm677_vm6 = vmor %vm675_vm5, %vm676_vm4  ;;  %v696_v56 = vand.u32 2147483648, %v649_v24  ;;  %v694_v60 = vand.u32 2147483647, %v649_v24 }
 0x12b   : > { %v775_v30 = vmul.f32 %v668_v28, %v539_v57  ;;  %v672_v32 = vsub.f32 1.0, %v671_v27  ;;  %1307 = vpow2.f32 %v1119_v25  ;;  %v1123_v57 = vmul.f32 -1.442695, %v2035_v44 }
 0x12c   : > { %v550_v34 = vpop.f32.mrf.mxu0  ;;  %1309 = vpow2.f32 %v1122_v29  ;;  %vm690_vm9 = vweird.f32 %v649_v24  ;;  %v697_v2 = vor.u32 1.1754944e-38, %v696_v56  ;;  %vm695_vm11 = vcmp.eq.f32.partialorder %v694_v60, 8.507059e+37 }
 0x12d   : > { %v673_v35 = vmul.f32 %v1304_v22, %v672_v32  ;;  %v2031_v38 = vadd.f32 %v1999_v53, %v550_v34  ;;  %v783_v41 = vmul.f32 %v775_v30, %v600_v31  ;;  %v609_v27 = vadd.f32 %v2025_v20, %v608_v11  ;;  %v611_v34 = vpop.f32.mrf.mxu1 }
 0x12f   : > { %v674_v39 = vadd.f32 %v1304_v22, %v673_v35  ;;  %v1120_v40 = vmul.f32 -1.442695, %v2031_v38  ;;  %831 = vmatmul.f32.vlgmr.msra.gmra.mxu2 %v783_v41 }
 0x130   : > { %v1306_v42 = vpop.eup %1305 }
 0x131   : > { %v1308_v45 = vpop.eup %1307  ;;  %v678_v46 = vsel %vm677_vm6, %v1304_v22, %v674_v39  ;;  %v686_v47 = vmul.f32 %v1306_v42, %v649_v24  ;;  %1311 = vpow2.f32 %v1120_v40  ;;  %vm691_vm8 = vweird.f32 %v1306_v42 }
 0x132   : > { %v683_v49 = vsel %vm680_vm7, %v682_v43, %v678_v46  ;;  %v650_v50 = vadd.f32 1.0, %v1308_v45  ;;  %v1310_v54 = vpop.eup %1309  ;;  %vm692_vm10 = vmor %vm690_vm9, %vm691_vm8 }
 0x133   : > { %v687_v52 = vsub.f32 1.0, %v686_v47  ;;  %v776_v55 = vmul.f32 %v683_v49, %v2007_v62  ;;  %v2043_v0 = vadd.f32 1.0, %v1310_v54 }
 0x134   : > { %1313 = vrcp.f32 %v650_v50  ;;  %v553_v58 = vpop.f32.mrf.mxu0  ;;  %v711_v14 = vand.u32 2147483648, %v650_v50  ;;  %v709_v19 = vand.u32 2147483647, %v650_v50  ;;  %vm705_vm13 = vweird.f32 %v650_v50 }
 0x135   : > { %v688_v59 = vmul.f32 %v1306_v42, %v687_v52  ;;  %v2041_v61 = vadd.f32 %v1999_v53, %v553_v58  ;;  %1315 = vpow2.f32 %v1123_v57  ;;  %v784_v3 = vmul.f32 %v776_v55, %v603_v51  ;;  %v614_v57 = vpop.f32.mrf.mxu1 }
 0x136   : > { %v712_v26 = vor.u32 1.1754944e-38, %v711_v14  ;;  %vm710_vm15 = vcmp.eq.f32.partialorder %v709_v19, 8.507059e+37  ;;  %vm750_vm5 = vweird.f32 %v2043_v0 }
 0x137   : > { %v689_v63 = vadd.f32 %v1306_v42, %v688_v59  ;;  %v1312_v1 = vpop.eup %1311  ;;  %v1121_v62 = vmul.f32 -1.442695, %v2041_v61  ;;  %834 = vmatmul.f32.gmra.mxu2 %v784_v3  ;;  %v615_v3 = vadd.f32 %v2025_v20, %v614_v57 }
 0x138   : > { %v651_v6 = vadd.f32 1.0, %v1312_v1 }
 0x139   : > { %v693_v5 = vsel %vm692_vm10, %v1306_v42, %v689_v63  ;;  %1317 = vpow2.f32 %v1121_v62  ;;  %v754_v63 = vand.u32 2147483647, %v2043_v0 }
 0x13a   : > { %v1314_v7 = vpop.eup %1313  ;;  %v698_v8 = vsel %vm695_vm11, %v697_v2, %v693_v5  ;;  %1319 = vrcp.f32 %v2043_v0  ;;  %v726_v35 = vand.u32 2147483648, %v651_v6  ;;  %v724_v37 = vand.u32 2147483647, %v651_v6 }
 0x13b   : > { %v777_v53 = vmul.f32 %v698_v8, %v2011_v4  ;;  %v701_v10 = vmul.f32 %v1314_v7, %v650_v50  ;;  %1321 = vrcp.f32 %v651_v6  ;;  %v1316_v13 = vpop.eup %1315  ;;  %vm706_vm12 = vweird.f32 %v1314_v7 }
 0x13c   : > { %v2051_v24 = vadd.f32 1.0, %v1316_v13  ;;  %vm707_vm14 = vmor %vm705_vm13, %vm706_vm12  ;;  %vm720_vm1 = vweird.f32 %v651_v6  ;;  %v727_v43 = vor.u32 1.1754944e-38, %v726_v35  ;;  %vm725_vm3 = vcmp.eq.f32.partialorder %v724_v37, 8.507059e+37  ;;  %v796_v37 = vld [vmem:[%s1899_s13 + $0x28] sm:$0xff] }
 0x13d   : > { %v702_v12 = vsub.f32 1.0, %v701_v10  ;;  %v785_v15 = vmul.f32 %v777_v53, %v606_v9  ;;  %vm755_vm11 = vcmp.eq.f32.partialorder %v754_v63, 8.507059e+37  ;;  %v617_v11 = vpop.f32.mrf.mxu1 }
 0x13e   : > { %vm765_vm12 = vweird.f32 %v2051_v24  ;;  %v771_v10 = vand.u32 2147483648, %v2051_v24  ;;  %v769_v13 = vand.u32 2147483647, %v2051_v24  ;;  %v618_v14 = vadd.f32 %v2025_v20, %v617_v11 }
 0x13f   : > { %v703_v18 = vmul.f32 %v1314_v7, %v702_v12  ;;  %v1318_v21 = vpop.eup %1317  ;;  %837 = vmatmul.f32.gmra.mxu2 %v785_v15 }
 0x140   : > { %v2049_v22 = vpop.eup %1319  ;;  %v652_v4 = vadd.f32 1.0, %v1318_v21  ;;  %v772_v15 = vor.u32 1.1754944e-38, %v771_v10 }
 0x141   : > { %v704_v23 = vadd.f32 %v1314_v7, %v703_v18  ;;  %v1322_v25 = vpop.eup %1321  ;;  %v746_v31 = vmul.f32 %v2049_v22, %v2043_v0  ;;  %vm751_vm6 = vweird.f32 %v2049_v22 }
 0x142   : > { %v716_v29 = vmul.f32 %v1322_v25, %v651_v6  ;;  %1323 = vrcp.f32 %v652_v4  ;;  %vm721_vm0 = vweird.f32 %v1322_v25  ;;  %v741_v52 = vand.u32 2147483648, %v652_v4  ;;  %vm752_vm10 = vmor %vm750_vm5, %vm751_vm6 }
 0x143   : > { %v708_v28 = vsel %vm707_vm14, %v1314_v7, %v704_v23  ;;  %1325 = vrcp.f32 %v2051_v24  ;;  %v747_v41 = vsub.f32 1.0, %v746_v31  ;;  %vm722_vm2 = vmor %vm720_vm1, %vm721_vm0  ;;  %v739_v56 = vand.u32 2147483647, %v652_v4 }
 0x144   : > { %v713_v30 = vsel %vm710_vm15, %v712_v26, %v708_v28  ;;  %v717_v33 = vsub.f32 1.0, %v716_v29  ;;  %vm735_vm7 = vweird.f32 %v652_v4  ;;  %v742_v1 = vor.u32 1.1754944e-38, %v741_v52 }
 0x145   : > { %v778_v32 = vmul.f32 %v713_v30, %v2018_v17  ;;  %v612_v17 = vadd.f32 %v2025_v20, %v611_v34  ;;  %v748_v50 = vmul.f32 %v2049_v22, %v747_v41  ;;  %vm740_vm9 = vcmp.eq.f32.partialorder %v739_v56, 8.507059e+37  ;;  %v793_v30 = vld [vmem:[%s1899_s13 + $0x10] sm:$0xff]  ;;  %v795_v34 = vld [vmem:[%s1899_s13 + $0x20] sm:$0xff] }
 0x146   : > { %v718_v36 = vmul.f32 %v1322_v25, %v717_v33  ;;  %vm770_vm15 = vcmp.eq.f32.partialorder %v769_v13, 8.507059e+37  ;;  %v797_v41 = vld [vmem:[%s1899_s13 + $0x30] sm:$0xff] }
 0x147   : > { %v786_v39 = vmul.f32 %v778_v32, %v609_v27  ;;  %v749_v60 = vadd.f32 %v2049_v22, %v748_v50  ;;  %v792_v27 = vld [vmem:[%s1899_s13 + $0x8] sm:$0xff] }
 0x148   : > { %v1324_v40 = vpop.eup %1323  ;;  %v719_v42 = vadd.f32 %v1322_v25, %v718_v36 }
 0x149   : > { %v731_v45 = vmul.f32 %v1324_v40, %v652_v4  ;;  %840 = vmatmul.f32.gmra.mxu2 %v786_v39  ;;  %v1326_v46 = vpop.eup %1325  ;;  %vm736_vm4 = vweird.f32 %v1324_v40  ;;  %v753_v8 = vsel %vm752_vm10, %v2049_v22, %v749_v60  ;;  %v620_v22 = vpop.f32.mrf.mxu3  ;;  %v791_v4 = vld [vmem:[%s1899_s13] sm:$0xff] }
 0x14a   : > { %v723_v47 = vsel %vm722_vm2, %v1322_v25, %v719_v42  ;;  %v761_v54 = vmul.f32 %v1326_v46, %v2051_v24  ;;  %vm737_vm8 = vmor %vm735_vm7, %vm736_vm4  ;;  %vm766_vm13 = vweird.f32 %v1326_v46  ;;  %v621_v24 = vadd.f32 %v2025_v20, %v620_v22  ;;  %v794_v20 = vld [vmem:[%s1899_s13 + $0x18] sm:$0xff] }
 0x14b   : > { %v728_v48 = vsel %vm725_vm3, %v727_v43, %v723_v47  ;;  %v732_v49 = vsub.f32 1.0, %v731_v45  ;;  %vm767_vm14 = vmor %vm765_vm12, %vm766_vm13  ;;  %v798_v45 = vld [vmem:[%s1899_s13 + $0x38] sm:$0xff] }
 0x14c   : > { %v779_v51 = vmul.f32 %v728_v48, %v2031_v38  ;;  %v756_v38 = vand.u32 2147483648, %v2043_v0  ;;  %v762_v2 = vsub.f32 1.0, %v761_v54 }
 0x14d   : > { %v733_v55 = vmul.f32 %v1324_v40, %v732_v49 }
 0x14e   : > { %v787_v58 = vmul.f32 %v779_v51, %v612_v17  ;;  %v757_v7 = vor.u32 1.1754944e-38, %v756_v38  ;;  %v763_v9 = vmul.f32 %v1326_v46, %v762_v2 }
 0x14f   : > { %v734_v59 = vadd.f32 %v1324_v40, %v733_v55 }
 0x150   : > { %v758_v0 = vsel %vm755_vm11, %v757_v7, %v753_v8  ;;  %v764_v12 = vadd.f32 %v1326_v46, %v763_v9 }
 0x151   : > { %v738_v62 = vsel %vm737_vm8, %v1324_v40, %v734_v59  ;;  %843 = vmatmul.f32.gmra.mxu2 %v787_v58 }
 0x152   : > { %v743_v5 = vsel %vm740_vm9, %v742_v1, %v738_v62  ;;  %v768_v18 = vsel %vm767_vm14, %v1326_v46, %v764_v12 }
 0x153   : > { %v780_v6 = vmul.f32 %v743_v5, %v2041_v61  ;;  %v781_v61 = vmul.f32 %v758_v0, %v2015_v16  ;;  %v773_v21 = vsel %vm770_vm15, %v772_v15, %v768_v18 }
 0x154   : > { %v782_v23 = vmul.f32 %v773_v21, %v2035_v44 }
 0x155   : > { %v788_v53 = vmul.f32 %v780_v6, %v615_v3  ;;  %v789_v19 = vmul.f32 %v781_v61, %v618_v14 }
 0x156   : > { %v790_v16 = vmul.f32 %v782_v23, %v621_v24 }
 0x159   : > { %846 = vmatmul.f32.gmra.mxu2 %v788_v53 }
 0x161   : > { %849 = vmatmul.f32.gmra.mxu2 %v789_v19 }
 0x169   : > { %852 = vmatmul.f32.gmra.mxu2 %v790_v16 }
 0x1b2   : > { %v832_v25 = vpop.f32.mrf.mxu2 }
 0x1b3   : > { %v856_v26 = vadd.f32 %v832_v25, %v791_v4 }
 0x1b5   : > { %864 = vst [vmem:[%s1899_s13] sm:$0xff] %v856_v26 }
 0x1ba   : > { %v835_v28 = vpop.f32.mrf.mxu2 }
 0x1bb   : > { %v857_v29 = vadd.f32 %v835_v28, %v792_v27 }
 0x1bd   : > { %865 = vst [vmem:[%s1899_s13 + $0x8] sm:$0xff] %v857_v29 }
 0x1c2   : > { %v838_v44 = vpop.f32.mrf.mxu2 }
 0x1c3   : > { %v858_v31 = vadd.f32 %v838_v44, %v793_v30 }
 0x1c5   : > { %866 = vst [vmem:[%s1899_s13 + $0x10] sm:$0xff] %v858_v31 }
 0x1cc   : > { %v841_v32 = vpop.f32.mrf.mxu2 }
 0x1cd   : > { %v859_v33 = vadd.f32 %v841_v32, %v794_v20 }
 0x1cf   : > { %867 = vst [vmem:[%s1899_s13 + $0x18] sm:$0xff] %v859_v33 }
 0x1d4   : > { %v844_v35 = vpop.f32.mrf.mxu2 }
 0x1d5   : > { %v860_v36 = vadd.f32 %v844_v35, %v795_v34 }
 0x1d7   : > { %868 = vst [vmem:[%s1899_s13 + $0x20] sm:$0xff] %v860_v36 }
 0x1dc   : > { %v847_v39 = vpop.f32.mrf.mxu2 }
 0x1dd   : > { %v861_v40 = vadd.f32 %v847_v39, %v796_v37 }
 0x1df   : > { %869 = vst [vmem:[%s1899_s13 + $0x28] sm:$0xff] %v861_v40 }
 0x1e4   : > { %v850_v42 = vpop.f32.mrf.mxu2 }
 0x1e5   : > { %v862_v43 = vadd.f32 %v850_v42, %v797_v41 }
 0x1e7   : > { %870 = vst [vmem:[%s1899_s13 + $0x30] sm:$0xff] %v862_v43 }
 0x1eb   : > { %875 = sbr.rel (%p1124_p8) target bundleno = 507 (0x1fb), region = 76 }
 0x1ec   : > { %v853_v46 = vpop.f32.mrf.mxu2 }
 0x1ed   : > { %v863_v47 = vadd.f32 %v853_v46, %v798_v45 }
 0x1ef   : > { %871 = vst [vmem:[%s1899_s13 + $0x38] sm:$0xff] %v863_v47 }
 0x1f0   : > { %v876_v17 = vld [vmem:[%s1899_s13] sm:$0xff]  ;;  %v1327_v48 = vld [vmem:[%s2230_s2] ss:$0 sm:$0xff]  ;;  %v877_v49 = vld [vmem:[%s1899_s13 + $0x8] sm:$0xff] }
 0x1f1   : > { %v878_v50 = vld [vmem:[%s1899_s13 + $0x10] sm:$0xff]  ;;  %v879_v51 = vld [vmem:[%s1899_s13 + $0x18] sm:$0xff]  ;;  %v888_v52 = vadd.f32 %v1327_v48, %v876_v17  ;;  %v889_v54 = vadd.f32 %v1327_v48, %v877_v49  ;;  %v880_v56 = vld [vmem:[%s1899_s13 + $0x20] sm:$0xff] }
 0x1f2   : > { %v890_v55 = vadd.f32 %v1327_v48, %v878_v50  ;;  %v881_v57 = vld [vmem:[%s1899_s13 + $0x28] sm:$0xff]  ;;  %v891_v58 = vadd.f32 %v1327_v48, %v879_v51  ;;  %v882_v59 = vld [vmem:[%s1899_s13 + $0x30] sm:$0xff]  ;;  %v892_v60 = vadd.f32 %v1327_v48, %v880_v56 }
 0x1f3   : > { %896 = vst [vmem:[%s1899_s13] sm:$0xff] %v888_v52  ;;  %v893_v38 = vadd.f32 %v1327_v48, %v881_v57  ;;  %v894_v1 = vadd.f32 %v1327_v48, %v882_v59 }
 0x1f4   : > { %897 = vst [vmem:[%s1899_s13 + $0x8] sm:$0xff] %v889_v54 }
 0x1f5   : > { %898 = vst [vmem:[%s1899_s13 + $0x10] sm:$0xff] %v890_v55 }
 0x1f6   : > { %v883_v63 = vld [vmem:[%s1899_s13 + $0x38] sm:$0xff]  ;;  %899 = vst [vmem:[%s1899_s13 + $0x18] sm:$0xff] %v891_v58 }
 0x1f7   : > { %v895_v2 = vadd.f32 %v1327_v48, %v883_v63  ;;  %900 = vst [vmem:[%s1899_s13 + $0x20] sm:$0xff] %v892_v60 }
 0x1f8   : > { %901 = vst [vmem:[%s1899_s13 + $0x28] sm:$0xff] %v893_v38 }
 0x1f9   : > { %902 = vst [vmem:[%s1899_s13 + $0x30] sm:$0xff] %v894_v1 }
 0x1fa   : > { %903 = vst [vmem:[%s1899_s13 + $0x38] sm:$0xff] %v895_v2 }
 0x1fb PF: > { %s2231_s3 = sld [smem:[#allocation18_spill]]  ;;  %s917_s16 = sshll.u32 %s1899_s13, 4  ;;  %s918_s16 = int_to_ptr.vmem [resolvable:$true] %s917_s16 }
 0x1fc   : > { %s2233_s7 = sld [smem:[#allocation33_spill]]  ;;  %s905_s6 = scalar_lea.sflag [#allocation4], %s1863_s0 }
 0x201   : > { %s1132_s18 = sshll.u32 %s2231_s3, 6 }
 0x202   : > { %s916_s8 = scalar_lea.hbm %s2233_s7, %s1132_s18  ;;  %s1498_s4 = scalar_lea.hbm %s2233_s7, 128 }
 0x203   : > { %s919_s1 = sshll.u32 %s916_s8, 4  ;;  %s920_s1 = int_to_ptr.hbm [resolvable:$true] %s919_s1 }
 0x204   : > { %s1492_s30 = sshra.s32 %s920_s1, 4  ;;  %s1493_s30 = int_to_ptr.hbm [resolvable:$true] %s1492_s30 }
 0x205   : > { %s1494_s17 = scalar_lea.hbm %s1493_s30, 64  ;;  %p1499_p6 = scmp.lt.s32.totalorder %s1493_s30, %s2233_s7 }
 0x206   : > { %p1495_p11 = scmp.ne.s32.totalorder %s1493_s30, %s1494_s17  ;;  %p1500_p0 = scmp.lt.s32.totalorder %s1498_s4, %s1494_s17 }
 0x208   : > { %p1496_p12 = pnand %p1495_p11, %p1809_p13  ;;  %p1501_p7 = por %p1500_p0, %p1499_p6 }
 0x20a   : > { %p1497_p4 = pneg %p1496_p12 }
 0x20c   : > { %p1502_p9 = pnand %p1501_p7, %p1497_p4 }
 0x20e   : > { %1505 = shalt.err (!%p1502_p9)
}
 0x20f   : > { %s1614_s0 = smov 128   ;;  %s1615_s13 = smov 8  }
 0x210   : > { %1175 = dma.vmem_to_hbm [thread:$0]  (%p1809_p13), %s918_s16, 1024, %s920_s1, %s905_s6, %s1614_s0, %s1614_s0, %s1615_s13  }
 0x211 PF: > { %p1198_p10 = scmp.ge.s32.totalorder %s1608_s11, 2  ;;  %s934_s10 = sand.u32 1, %s1580_s27  }
 0x212   : > { %s935_s14 = scalar_lea.sflag [#allocation4], %s934_s10 }
 0x213   : > { %p1194_p1 = pnand %p1198_p10, %p1825_p2 }
 0x215   : > { %p1195_p3 = pneg %p1194_p1 }
 0x217   : > { %1563 = dma.done.wait (%p1195_p3), %s935_s14, 1024  }
 0x218   : > { %1565 = vsyncadd (%p1195_p3), %s935_s14, 4294966272  ;;  %s29_s11 = sadd.s32 1, %s1608_s11   ;;  %s2235_s15 = sld [smem:[#allocation24_spill]] }
 0x219   : > { %p26_p5 = scmp.ge.s32.totalorder %s29_s11, 6   ;;  %s2236_s2 = sld [smem:[#allocation16_spill]] }
 0x21a   : > { %s2237_s29 = sld [smem:[#allocation25_spill]]  ;;  %s2241_s24 = smov %s1572_s25 }
 0x21b   : > { %s2238_s8 = sld [smem:[#allocation19_spill]]  ;;  %s2242_s25 = smov %s1576_s26 }
 0x21c   : > { %s2239_s3 = sld [smem:[#allocation20_spill]]  ;;  %s2244_s27 = smov %s1584_s28 }
 0x21d   : > { %s2240_s10 = sld [smem:[#allocation21_spill]]  ;;  %s2246_s30 = smov %s1600_s9 }
 0x21e   : > { %s2243_s26 = smov %s2235_s15  ;;  %28 = sbr.rel (!%p26_p5) target bundleno = 21 (0x15), region = 152 }
 0x21f   : > { %s2245_s28 = smov %s2236_s2 }
 0x222   : > { %s2247_s9 = smov %s2239_s3 }
 0x223   :  { %941 = vsyncpa [#allocation3], 1 }
 0x224   :  { %943 = vsyncpa [#allocation3 + $0x1], 1 }
 0x225   :  { %944 = vsyncpa [#allocation6], 1 }
 0x226   :  { %946 = vsyncpa [#allocation6 + $0x1], 1 }
 0x227   :  { %947 = vsyncpa [#allocation9], 1 }
 0x228   :  { %949 = vsyncpa [#allocation9 + $0x1], 1 }
 0x229   :  { %950 = vsyncpa [#allocation4], 1 }
 0x22a   :  { %952 = vsyncpa [#allocation4 + $0x1], 1 }

</bundles_post_ra>
